<compile_context>
chip_gen: v5e
topology: v5e:2x2
jax: 0.10.0
libtpu: 0.0.40
codegen_flags: <defaults>
</compile_context>

<pallas_src>
import functools

import jax
import jax.numpy as jnp
from jax.experimental import pallas as pl
from jax.experimental.pallas import tpu as pltpu


# ----------------------------------------------------------------------------
# Kernel: pure elementwise map on the VMEM tile (VPU / EUP work).
# ----------------------------------------------------------------------------
def _lambda_kernel(x_ref, o_ref, *, func):
    o_ref[...] = func(x_ref[...]).astype(o_ref.dtype)


# ----------------------------------------------------------------------------
# Tiling constants / helpers.
# ----------------------------------------------------------------------------
_LANE = 128
_MAX_COLS = 4096                        # lane-dense last dim (multiple of 128)
_TARGET_TILE_BYTES = 2 * 1024 * 1024    # ~2 MiB/tile, safe on all chips
_VMEM_LIMIT_BYTES = 32 * 1024 * 1024    # in+out double-buffered + headroom
_MIN_STEPS = 4                          # >= 2 steps per TC on v7x megacore


def _sublane_multiple(dtype):
    """Required second-to-last block-dim multiple for packed vregs."""
    itemsize = jnp.dtype(dtype).itemsize
    if itemsize >= 4:
        return 8                     # f32 / i32
    return 8 * (4 // itemsize)       # 16 for bf16/f16, 32 for int8/fp8


def _choose_cols(total):
    """Largest multiple of 128 dividing `total`, capped at _MAX_COLS."""
    best = _LANE
    c = _LANE
    while c <= _MAX_COLS:
        if total % c == 0:
            best = c
        c += _LANE
    return best


def _pick_row_tile(rows, cols, itemsize, sub):
    """Row tile: <= ~2 MiB, multiple of `sub`, >= _MIN_STEPS grid steps when
    possible, preferring a tile that divides `rows` with an even step count
    (balanced blocks across both v7x TensorCores, no masked tail stores)."""
    if rows < 2 * sub:
        return rows                  # too small to split on a sublane boundary

    max_tile = max((_TARGET_TILE_BYTES // (cols * itemsize)) // sub * sub, sub)
    cap = max(min(max_tile, (rows // _MIN_STEPS) // sub * sub), sub)

    best_even = None
    best_any = None
    t = cap
    while t >= sub:
        if rows % t == 0:
            if best_any is None:
                best_any = t
            if (rows // t) % 2 == 0:
                best_even = t
                break
        t -= sub
    if best_even is not None:
        return best_even
    if best_any is not None:
        return best_any
    return cap                       # rows not a multiple of sub: partial tail


# ----------------------------------------------------------------------------
# Wrapper: the Pallas equivalent of Lambda(func)(x) for elementwise func.
# ----------------------------------------------------------------------------
def pallas_lambda(func, x, *, min_bytes_for_kernel=4 * 1024 * 1024,
                  donate_input=False):
    """Apply an elementwise, shape-preserving `func` to `x` via a Pallas TPU
    kernel.  Equivalent to PyTorch `Lambda(func).forward(x)`.

    Falls back to plain JAX (XLA-fused, single HBM pass) when:
      * the tensor is small (< min_bytes_for_kernel),
      * the element count is not a multiple of 128 (padding would add two
        extra full HBM passes), or
      * `func` is not shape-preserving (not an elementwise map).
    Set `donate_input=True` only if the caller donates `x`; the output then
    aliases the input buffer (same-dtype funcs only).
    """
    orig_shape = x.shape
    in_dtype = x.dtype
    total = x.size
    in_itemsize = jnp.dtype(in_dtype).itemsize

    if (total == 0
            or total * in_itemsize < min_bytes_for_kernel
            or total % _LANE != 0):
        return func(x)

    # Derive the output dtype (func may promote/demote) and guard against
    # non-elementwise funcs (reductions, reshapes, broadcasts).
    out_aval = jax.eval_shape(func, jax.ShapeDtypeStruct(orig_shape, in_dtype))
    if out_aval.shape != orig_shape:
        # TODO(synk): non-elementwise Lambda funcs need a bespoke kernel.
        return func(x)
    out_dtype = out_aval.dtype
    out_itemsize = jnp.dtype(out_dtype).itemsize

    # ---- Lane-dense 2-D slab [rows, cols]; cols divides total (no padding).
    cols = _choose_cols(total)
    rows = total // cols
    x2d = x.reshape(rows, cols)

    # ---- Row tile: dtype-aware sublane multiple, >= _MIN_STEPS grid steps.
    sub = max(_sublane_multiple(in_dtype), _sublane_multiple(out_dtype))
    row_tile = _pick_row_tile(rows, cols, max(in_itemsize, out_itemsize), sub)
    grid = (pl.cdiv(rows, row_tile),)

    # ---- Cost estimate from func (so transcendentals are reported correctly).
    try:
        cost = pl.estimate_cost(func, jax.ShapeDtypeStruct((rows, cols), in_dtype))
    except Exception:
        cost = pl.CostEstimate(
            flops=2 * total,
            transcendentals=0,
            bytes_accessed=total * (in_itemsize + out_itemsize),
        )

    aliases = {0: 0} if (donate_input and out_dtype == in_dtype) else {}

    out2d = pl.pallas_call(
        functools.partial(_lambda_kernel, func=func),
        out_shape=jax.ShapeDtypeStruct((rows, cols), out_dtype),
        grid_spec=pltpu.PrefetchScalarGridSpec(
            num_scalar_prefetch=0,
            grid=grid,
            in_specs=[pl.BlockSpec((row_tile, cols), lambda i: (i, 0))],
            out_specs=pl.BlockSpec((row_tile, cols), lambda i: (i, 0)),
        ),
        compiler_params=pltpu.CompilerParams(
            # "parallel" lets the >=4-step grid shard across v7x's 2 TCs.
            # (pltpu.CORE_PARALLEL is a further tuning knob on v7x.)
            dimension_semantics=("parallel",),
            vmem_limit_bytes=_VMEM_LIMIT_BYTES,
        ),
        cost_estimate=cost,
        input_output_aliases=aliases,
    )(x2d)

    return out2d.reshape(orig_shape)


# ----------------------------------------------------------------------------
# Demo / correctness check
# ----------------------------------------------------------------------------
if __name__ == "__main__":
    key = jax.random.PRNGKey(0)
    k1, k2, k3, k4, k5 = jax.random.split(key, 5)

    # The `func` this Lambda wraps (elementwise).
    relu2p1 = lambda t: jnp.maximum(t, 0.0) * 2.0 + 1.0

    # 1) Module-sized NCHW input: batch=2, channels=4, spatial=16x16 (f32).
    #    Force the kernel path so the Pallas kernel is exercised.
    x1 = jax.random.normal(k1, (2, 4, 16, 16), dtype=jnp.float32)
    out1 = jax.block_until_ready(pallas_lambda(relu2p1, x1, min_bytes_for_kernel=0))
    ref1 = relu2p1(x1)
    assert out1.shape == ref1.shape and out1.dtype == ref1.dtype
    assert jnp.allclose(out1, ref1, atol=1e-6, rtol=1e-6)

    # 2) Larger f32 input exercising the wide-slab / multi-step grid path
    #    (rows=64, cols=4096 -> 4 even grid steps, tile divides rows).
    x2 = jax.random.normal(k2, (4, 16, 32, 128), dtype=jnp.float32)
    out2 = jax.block_until_ready(pallas_lambda(relu2p1, x2, min_bytes_for_kernel=0))
    assert jnp.allclose(out2, relu2p1(x2), atol=1e-6, rtol=1e-6)

    # 3) bf16 input (dtype-aware sublane multiple = 16).
    x3 = jax.random.normal(k3, (2, 3, 16, 16), dtype=jnp.bfloat16)
    out3 = jax.block_until_ready(pallas_lambda(relu2p1, x3, min_bytes_for_kernel=0))
    assert out3.dtype == jnp.bfloat16
    assert jnp.allclose(out3.astype(jnp.float32),
                        relu2p1(x3).astype(jnp.float32), atol=1e-2, rtol=1e-2)

    # 4) Dtype-promoting func (bf16 -> f32) with a transcendental; exercises
    #    the eval_shape-derived output dtype and estimate_cost paths.
    expf = lambda t: jnp.exp(t.astype(jnp.float32))
    x4 = jax.random.normal(k4, (2, 16, 32, 128), dtype=jnp.bfloat16)
    out4 = jax.block_until_ready(pallas_lambda(expf, x4, min_bytes_for_kernel=0))
    assert out4.dtype == jnp.float32
    assert jnp.allclose(out4, expf(x4), atol=1e-5, rtol=1e-5)

    # 5) Element count not divisible by 128 -> plain-JAX fallback (no pad copy).
    x5 = jax.random.normal(k5, (3, 5, 7, 11), dtype=jnp.float32)
    out5 = jax.block_until_ready(pallas_lambda(relu2p1, x5, min_bytes_for_kernel=0))
    assert jnp.allclose(out5, relu2p1(x5), atol=1e-6, rtol=1e-6)

    # 6) Small-input fast path (default 4 MiB threshold -> plain JAX).
    out6 = jax.block_until_ready(pallas_lambda(relu2p1, x1))
    assert jnp.allclose(out6, ref1, atol=1e-6, rtol=1e-6)

    print("KERNEL_OK")
</pallas_src>

<mosaic_0001>
module attributes {stable_mosaic.version = 11 : i64} {
  func.func @_lambda_kernel(%arg0: i32, %arg1: memref<1x2048xf32, #tpu.memory_space<vmem>>, %arg2: memref<1x2048xf32, #tpu.memory_space<vmem>>) attributes {dimension_semantics = [#tpu.dimension_semantics<parallel>], iteration_bounds = array<i64: 1>, scalar_prefetch = 0 : i64, scratch_operands = 0 : i64, tpu.core_type = #tpu.core_type<tc>, window_params = [{transform_indices = @transform_0, window_bounds = array<i64: 1, 2048>}, {transform_indices = @transform_1, window_bounds = array<i64: 1, 2048>}]} {
    %c0 = arith.constant 0 : index
    %c0_0 = arith.constant 0 : index
    %0 = vector.load %arg1[%c0, %c0_0] : memref<1x2048xf32, #tpu.memory_space<vmem>>, vector<1x2048xf32>
    %cst = arith.constant 0.000000e+00 : f32
    %1 = vector.broadcast %cst : f32 to vector<1x2048xf32>
    %2 = arith.maximumf %0, %1 : vector<1x2048xf32>
    %cst_1 = arith.constant 2.000000e+00 : f32
    %3 = vector.broadcast %cst_1 : f32 to vector<1x2048xf32>
    %4 = arith.mulf %2, %3 : vector<1x2048xf32>
    %cst_2 = arith.constant 1.000000e+00 : f32
    %5 = vector.broadcast %cst_2 : f32 to vector<1x2048xf32>
    %6 = arith.addf %4, %5 : vector<1x2048xf32>
    %c0_3 = arith.constant 0 : index
    %c0_4 = arith.constant 0 : index
    %7 = vector.load %arg2[%c0_3, %c0_4] : memref<1x2048xf32, #tpu.memory_space<vmem>>, vector<1x2048xf32>
    tpu.vector_store %arg2[%c0_3, %c0_4], %6 {strides = array<i32>} : memref<1x2048xf32, #tpu.memory_space<vmem>>, vector<1x2048xf32>,
    return
  }
  func.func @transform_0(%arg0: i32) -> (i32, i32) {
    %c0_i32 = arith.constant 0 : i32
    %c0_i32_0 = arith.constant 0 : i32
    return %arg0, %c0_i32 : i32, i32
  }
  func.func @transform_1(%arg0: i32) -> (i32, i32) {
    %c0_i32 = arith.constant 0 : i32
    %c0_i32_0 = arith.constant 0 : i32
    return %arg0, %c0_i32 : i32, i32
  }
}

</mosaic_0001>

<bundles_post_ra>
// kernel: tpu_custom_call.1
= control target key start
LH: loop header
LB: loop body
LE: loop exit
PB: predicated region body
PF: predicated region fallthrough
CT: control target
= control target key end

     0   :  { %6 = vsyncpa [#allocation3], 0  ;;  %s122_s0 = inlined_call_operand.hbm [shape: f32[1,2048], index: 0, kind: input, shape index: {}]   ;;  %s123_s1 = inlined_call_operand.hbm [shape: f32[1,2048], index: 1, kind: output, shape index: {}]  }
   0x1   :  { %7 = vsyncpa [#allocation4], 0  ;;  %s13_s8 = sshll.u32 %s122_s0, 4  ;;  %s104_s9 = smov [#allocation2]   ;;  %s14_s8 = int_to_ptr.hbm [resolvable:$true] %s13_s8 }
   0x2   :  { %s15_s10 = sshll.u32 %s104_s9, 4  ;;  %s16_s10 = int_to_ptr.vmem [resolvable:$true] %s15_s10 }
   0x3   :  { %18 = dma.hbm_to_vmem [thread:$0]  %s14_s8, 256, %s16_s10, [#allocation3]  }
   0x4   :  { %100 = dma.done.wait [#allocation3], 256  }
   0x5   :  { %101 = vsyncadd [#allocation3], 4294967040  ;;  %v23_v0 = vld [vmem:[#allocation2] sm:$0xff]  ;;  %v24_v1 = vld [vmem:[#allocation2 + $0x8] sm:$0xff]  ;;  %s105_s11 = smov [#allocation5]   ;;  %s40_s15 = sshll.u32 %s123_s1, 4  ;;  %s41_s15 = int_to_ptr.hbm [resolvable:$true] %s40_s15 }
   0x6   :  { %v25_v2 = vmax.f32 %v23_v0, 0.0  ;;  %v26_v3 = vmax.f32 %v24_v1, 0.0  ;;  %s38_s12 = sshll.u32 %s105_s11, 4  ;;  %s39_s12 = int_to_ptr.vmem [resolvable:$true] %s38_s12 }
   0x8   :  { %v27_v4 = vmul.f32 2.0, %v25_v2  ;;  %v28_v5 = vmul.f32 2.0, %v26_v3 }
   0xa   :  { %v29_v6 = vadd.f32 1.0, %v27_v4  ;;  %v30_v7 = vadd.f32 1.0, %v28_v5 }
   0xc   :  { %31 = vst [vmem:[#allocation5] sm:$0xff] %v29_v6 }
   0xd   :  { %32 = vst [vmem:[#allocation5 + $0x8] sm:$0xff] %v30_v7 }
   0xe   :  { %43 = dma.vmem_to_hbm [thread:$0]  %s39_s12, 256, %s41_s15, [#allocation4]  }
   0xf   :  { %102 = dma.done.wait [#allocation4], 256  }
  0x10   :  { %103 = vsyncadd [#allocation4], 4294967040 }
  0x11   :  { %48 = vsyncpa [#allocation3], 1 }
  0x12   :  { %49 = vsyncpa [#allocation4], 1 }

</bundles_post_ra>
